<compile_context>
chip_gen: v5e
topology: v5e:2x2
jax: 0.10.0
libtpu: 0.0.40
codegen_flags: <defaults>
</compile_context>

<pallas_src>
import functools

import jax
import jax.numpy as jnp
from jax import lax
from jax.experimental import pallas as pl
from jax.experimental.pallas import tpu as pltpu


DMA_DEPTH = 8  # max in-flight row-gather DMAs per grid step (power of two)


def prompt_tuning_kernel(ids_ref,       # SMEM (B, S) int32   -- scalar-prefetched token ids
                         prompt_ref,    # VMEM (nvt, H)       -- prompt prefix table (tiny)
                         emb_hbm,       # HBM  (V, H)         -- word-embedding table (pl.ANY)
                         out_emb_ref,   # VMEM (nvt+S, H)     -- per-batch output block (B squeezed)
                         sem,           # DMA semaphores (DMA_DEPTH,)
                         *, nvt, seq_len):
    b = pl.program_id(0)

    # (2)+(3a): prompt prefix, broadcast over batch. One full-tile (nvt, H) store
    # (nvt is a multiple of 8 for f32 so this is an unmasked vst).
    out_emb_ref[0:nvt, :] = prompt_ref[...]

    # (1)+(3b): gather word-embedding rows HBM -> output VMEM block via DMA,
    # driven by the scalar-prefetched ids. Up to DMA_DEPTH copies in flight.
    def start_row(s, slot):
        tok = ids_ref[b, s]                                   # scalar read from SMEM
        pltpu.make_async_copy(
            emb_hbm.at[pl.ds(tok, 1), :],                     # (1, H) row in HBM
            out_emb_ref.at[pl.ds(nvt + s, 1), :],             # (1, H) row in VMEM output
            sem.at[slot]).start()

    def wait_slot(slot):
        # Same-shaped descriptor: .wait() only consumes the semaphore count.
        pltpu.make_async_copy(
            emb_hbm.at[pl.ds(0, 1), :],
            out_emb_ref.at[pl.ds(nvt, 1), :],
            sem.at[slot]).wait()

    n_inflight = min(DMA_DEPTH, seq_len)                      # static

    # Prologue: fill the DMA pipeline.
    for s in range(n_inflight):                               # small static unroll
        start_row(s, s % DMA_DEPTH)

    # Steady state: wait for the copy issued DMA_DEPTH steps ago, reuse its slot.
    if seq_len > DMA_DEPTH:                                   # static
        def steady(s, carry):
            slot = s & (DMA_DEPTH - 1)
            wait_slot(slot)
            start_row(s, slot)
            return carry
        lax.fori_loop(DMA_DEPTH, seq_len, steady, 0, unroll=8)

    # Drain: wait for the last n_inflight copies before the block is written back.
    for i in range(n_inflight):
        s = seq_len - n_inflight + i
        wait_slot(s % DMA_DEPTH)


def prompt_tuning_forward(input_ids, attention_mask, word_emb, prompt_emb,
                          num_virtual_tokens, labels=None):
    """Returns (inputs_embeds, attention_mask[, labels]) as fed to base_model."""
    B, S = input_ids.shape
    V, H = word_emb.shape
    nvt = num_virtual_tokens
    out_len = nvt + S

    # Prompt prefix actually used by forward(): first nvt rows, cast to embed dtype.
    prompt_prefix = prompt_emb[:nvt].astype(word_emb.dtype)

    kernel = functools.partial(prompt_tuning_kernel, nvt=nvt, seq_len=S)

    grid_spec = pltpu.PrefetchScalarGridSpec(
        num_scalar_prefetch=1,            # input_ids live in SMEM
        grid=(B,),                        # one grid step per batch row
        in_specs=[
            pl.BlockSpec((nvt, H), lambda b, ids: (0, 0)),    # prompt prefix (tiny, resident)
            pl.BlockSpec(memory_space=pl.ANY),                # word-emb table stays in HBM
        ],
        out_specs=pl.BlockSpec((None, out_len, H), lambda b, ids: (b, 0, 0)),
        scratch_shapes=[pltpu.SemaphoreType.DMA((DMA_DEPTH,))],
    )

    itemsize = jnp.dtype(word_emb.dtype).itemsize
    cost = pl.CostEstimate(
        flops=0,
        transcendentals=0,
        bytes_accessed=(B * S * H + nvt * H + B * out_len * H) * itemsize
        + B * S * 4,
    )

    inputs_embeds = pl.pallas_call(
        kernel,
        grid_spec=grid_spec,
        out_shape=jax.ShapeDtypeStruct((B, out_len, H), word_emb.dtype),
        compiler_params=pltpu.CompilerParams(
            dimension_semantics=("parallel",)),   # batch rows are independent
        cost_estimate=cost,
    )(input_ids.astype(jnp.int32), prompt_prefix, word_emb)

    # (4): mask prefix is trivial O(B*(nvt+S)) data -> plain JAX keeps the kernel
    # free of masked lane stores and the batch grid axis "parallel".
    attention_mask = jnp.concatenate(
        [jnp.ones((B, nvt), attention_mask.dtype), attention_mask], axis=1)

    if labels is not None:
        labels = jnp.concatenate(
            [jnp.full((B, nvt), -100, labels.dtype), labels], axis=1)
        return inputs_embeds, attention_mask, labels
    return inputs_embeds, attention_mask


if __name__ == "__main__":
    # Small, deterministic synthetic setup consistent with the module:
    #   vocab V=64, hidden H=128, batch B=2, seq S=8, num_virtual_tokens=8.
    B, S, H, V = 2, 8, 128, 64
    NVT = 8

    key = jax.random.PRNGKey(0)
    k_ids, k_emb, k_prompt = jax.random.split(key, 3)

    input_ids = jax.random.randint(k_ids, (B, S), 0, V, dtype=jnp.int32)
    attention_mask = jnp.ones((B, S), dtype=jnp.float32)
    word_emb = jax.random.normal(k_emb, (V, H), dtype=jnp.float32) * 0.02
    prompt_emb = jax.random.normal(k_prompt, (NVT, H), dtype=jnp.float32) * 0.02

    out_embeds, out_mask = prompt_tuning_forward(
        input_ids, attention_mask, word_emb, prompt_emb, NVT)
    jax.block_until_ready((out_embeds, out_mask))

    # Pure-JAX reference for correctness.
    ref_embeds = jnp.concatenate(
        [jnp.broadcast_to(prompt_emb[:NVT], (B, NVT, H)), word_emb[input_ids]],
        axis=1)
    ref_mask = jnp.concatenate(
        [jnp.ones((B, NVT), attention_mask.dtype), attention_mask], axis=1)

    assert out_embeds.shape == (B, NVT + S, H)
    assert out_mask.shape == (B, NVT + S)
    assert jnp.allclose(out_embeds, ref_embeds), "embeds mismatch"
    assert jnp.allclose(out_mask, ref_mask), "mask mismatch"

    print("KERNEL_OK")
</pallas_src>

<mosaic_0001>
module attributes {stable_mosaic.version = 11 : i64} {
  func.func @prompt_tuning_kernel(%arg0: i32, %arg1: memref<2x8xi32, #tpu.memory_space<smem>>, %arg2: memref<8x128xf32, #tpu.memory_space<vmem>>, %arg3: memref<64x128xf32, #tpu.memory_space<any>>, %arg4: memref<1x16x128xf32, #tpu.memory_space<vmem>>, %arg5: memref<8x!tpu.dma_semaphore, #tpu.memory_space<semaphore_mem>>) attributes {dimension_semantics = [#tpu.dimension_semantics<parallel>], iteration_bounds = array<i64: 2>, scalar_prefetch = 1 : i64, scratch_operands = 1 : i64, tpu.core_type = #tpu.core_type<tc>, window_params = [{pipeline_mode = #tpu.pipeline_mode<synchronous>, transform_indices = @transform_0, window_bounds = array<i64: 8, 128>}, {}, {transform_indices = @transform_2, window_bounds = array<i64: 1, 16, 128>}]} {
    %c0 = arith.constant 0 : index
    %c0_0 = arith.constant 0 : index
    %0 = vector.load %arg2[%c0, %c0_0] : memref<8x128xf32, #tpu.memory_space<vmem>>, vector<8x128xf32>
    %c0_1 = arith.constant 0 : index
    %c0_2 = arith.constant 0 : index
    %c0_3 = arith.constant 0 : index
    %1 = vector.load %arg4[%c0_1, %c0_2, %c0_3] : memref<1x16x128xf32, #tpu.memory_space<vmem>>, vector<1x8x128xf32>
    %2 = vector.shape_cast %1 : vector<1x8x128xf32> to vector<8x128xf32>
    %3 = vector.shape_cast %0 : vector<8x128xf32> to vector<1x8x128xf32>
    tpu.vector_store %arg4[%c0_1, %c0_2, %c0_3], %3 {strides = array<i32>} : memref<1x16x128xf32, #tpu.memory_space<vmem>>, vector<1x8x128xf32>,
    %4 = arith.index_cast %arg0 : i32 to index
    %c0_4 = arith.constant 0 : index
    %5 = memref.load %arg1[%4, %c0_4] : memref<2x8xi32, #tpu.memory_space<smem>>
    %c0_i32 = arith.constant 0 : i32
    %c0_i32_5 = arith.constant 0 : i32
    %6 = tpu.memref_slice %arg3[%5, %c0_i32_5] : memref<64x128xf32, #tpu.memory_space<any>> -> memref<1x128xf32, #tpu.memory_space<any>>
    %c0_i32_6 = arith.constant 0 : i32
    %c8_i32 = arith.constant 8 : i32
    %c0_i32_7 = arith.constant 0 : i32
    %7 = tpu.memref_slice %arg4[%c0_i32_6, %c8_i32, %c0_i32_7] : memref<1x16x128xf32, #tpu.memory_space<vmem>> -> memref<1x1x128xf32, #tpu.memory_space<vmem>>
    %8 = tpu.memref_squeeze %7 : memref<1x1x128xf32, #tpu.memory_space<vmem>> -> memref<1x128xf32, #tpu.memory_space<vmem>>
    %9 = tpu.memref_slice %arg5[%c0_i32] : memref<8x!tpu.dma_semaphore, #tpu.memory_space<semaphore_mem>> -> memref<1x!tpu.dma_semaphore, #tpu.memory_space<semaphore_mem>>
    %10 = tpu.memref_squeeze %9 : memref<1x!tpu.dma_semaphore, #tpu.memory_space<semaphore_mem>> -> memref<!tpu.dma_semaphore, #tpu.memory_space<semaphore_mem>>
    tpu.enqueue_dma source(%6 : memref<1x128xf32, #tpu.memory_space<any>>) target(%8 : memref<1x128xf32, #tpu.memory_space<vmem>>) target_semaphore(%10 : memref<!tpu.dma_semaphore, #tpu.memory_space<semaphore_mem>>)
    %11 = arith.index_cast %arg0 : i32 to index
    %c1 = arith.constant 1 : index
    %12 = memref.load %arg1[%11, %c1] : memref<2x8xi32, #tpu.memory_space<smem>>
    %c1_i32 = arith.constant 1 : i32
    %c0_i32_8 = arith.constant 0 : i32
    %13 = tpu.memref_slice %arg3[%12, %c0_i32_8] : memref<64x128xf32, #tpu.memory_space<any>> -> memref<1x128xf32, #tpu.memory_space<any>>
    %c0_i32_9 = arith.constant 0 : i32
    %c9_i32 = arith.constant 9 : i32
    %c0_i32_10 = arith.constant 0 : i32
    %14 = tpu.memref_slice %arg4[%c0_i32_9, %c9_i32, %c0_i32_10] : memref<1x16x128xf32, #tpu.memory_space<vmem>> -> memref<1x1x128xf32, #tpu.memory_space<vmem>>
    %15 = tpu.memref_squeeze %14 : memref<1x1x128xf32, #tpu.memory_space<vmem>> -> memref<1x128xf32, #tpu.memory_space<vmem>>
    %16 = tpu.memref_slice %arg5[%c1_i32] : memref<8x!tpu.dma_semaphore, #tpu.memory_space<semaphore_mem>> -> memref<1x!tpu.dma_semaphore, #tpu.memory_space<semaphore_mem>>
    %17 = tpu.memref_squeeze %16 : memref<1x!tpu.dma_semaphore, #tpu.memory_space<semaphore_mem>> -> memref<!tpu.dma_semaphore, #tpu.memory_space<semaphore_mem>>
    tpu.enqueue_dma source(%13 : memref<1x128xf32, #tpu.memory_space<any>>) target(%15 : memref<1x128xf32, #tpu.memory_space<vmem>>) target_semaphore(%17 : memref<!tpu.dma_semaphore, #tpu.memory_space<semaphore_mem>>)
    %18 = arith.index_cast %arg0 : i32 to index
    %c2 = arith.constant 2 : index
    %19 = memref.load %arg1[%18, %c2] : memref<2x8xi32, #tpu.memory_space<smem>>
    %c2_i32 = arith.constant 2 : i32
    %c0_i32_11 = arith.constant 0 : i32
    %20 = tpu.memref_slice %arg3[%19, %c0_i32_11] : memref<64x128xf32, #tpu.memory_space<any>> -> memref<1x128xf32, #tpu.memory_space<any>>
    %c0_i32_12 = arith.constant 0 : i32
    %c10_i32 = arith.constant 10 : i32
    %c0_i32_13 = arith.constant 0 : i32
    %21 = tpu.memref_slice %arg4[%c0_i32_12, %c10_i32, %c0_i32_13] : memref<1x16x128xf32, #tpu.memory_space<vmem>> -> memref<1x1x128xf32, #tpu.memory_space<vmem>>
    %22 = tpu.memref_squeeze %21 : memref<1x1x128xf32, #tpu.memory_space<vmem>> -> memref<1x128xf32, #tpu.memory_space<vmem>>
    %23 = tpu.memref_slice %arg5[%c2_i32] : memref<8x!tpu.dma_semaphore, #tpu.memory_space<semaphore_mem>> -> memref<1x!tpu.dma_semaphore, #tpu.memory_space<semaphore_mem>>
    %24 = tpu.memref_squeeze %23 : memref<1x!tpu.dma_semaphore, #tpu.memory_space<semaphore_mem>> -> memref<!tpu.dma_semaphore, #tpu.memory_space<semaphore_mem>>
    tpu.enqueue_dma source(%20 : memref<1x128xf32, #tpu.memory_space<any>>) target(%22 : memref<1x128xf32, #tpu.memory_space<vmem>>) target_semaphore(%24 : memref<!tpu.dma_semaphore, #tpu.memory_space<semaphore_mem>>)
    %25 = arith.index_cast %arg0 : i32 to index
    %c3 = arith.constant 3 : index
    %26 = memref.load %arg1[%25, %c3] : memref<2x8xi32, #tpu.memory_space<smem>>
    %c3_i32 = arith.constant 3 : i32
    %c0_i32_14 = arith.constant 0 : i32
    %27 = tpu.memref_slice %arg3[%26, %c0_i32_14] : memref<64x128xf32, #tpu.memory_space<any>> -> memref<1x128xf32, #tpu.memory_space<any>>
    %c0_i32_15 = arith.constant 0 : i32
    %c11_i32 = arith.constant 11 : i32
    %c0_i32_16 = arith.constant 0 : i32
    %28 = tpu.memref_slice %arg4[%c0_i32_15, %c11_i32, %c0_i32_16] : memref<1x16x128xf32, #tpu.memory_space<vmem>> -> memref<1x1x128xf32, #tpu.memory_space<vmem>>
    %29 = tpu.memref_squeeze %28 : memref<1x1x128xf32, #tpu.memory_space<vmem>> -> memref<1x128xf32, #tpu.memory_space<vmem>>
    %30 = tpu.memref_slice %arg5[%c3_i32] : memref<8x!tpu.dma_semaphore, #tpu.memory_space<semaphore_mem>> -> memref<1x!tpu.dma_semaphore, #tpu.memory_space<semaphore_mem>>
    %31 = tpu.memref_squeeze %30 : memref<1x!tpu.dma_semaphore, #tpu.memory_space<semaphore_mem>> -> memref<!tpu.dma_semaphore, #tpu.memory_space<semaphore_mem>>
    tpu.enqueue_dma source(%27 : memref<1x128xf32, #tpu.memory_space<any>>) target(%29 : memref<1x128xf32, #tpu.memory_space<vmem>>) target_semaphore(%31 : memref<!tpu.dma_semaphore, #tpu.memory_space<semaphore_mem>>)
    %32 = arith.index_cast %arg0 : i32 to index
    %c4 = arith.constant 4 : index
    %33 = memref.load %arg1[%32, %c4] : memref<2x8xi32, #tpu.memory_space<smem>>
    %c4_i32 = arith.constant 4 : i32
    %c0_i32_17 = arith.constant 0 : i32
    %34 = tpu.memref_slice %arg3[%33, %c0_i32_17] : memref<64x128xf32, #tpu.memory_space<any>> -> memref<1x128xf32, #tpu.memory_space<any>>
    %c0_i32_18 = arith.constant 0 : i32
    %c12_i32 = arith.constant 12 : i32
    %c0_i32_19 = arith.constant 0 : i32
    %35 = tpu.memref_slice %arg4[%c0_i32_18, %c12_i32, %c0_i32_19] : memref<1x16x128xf32, #tpu.memory_space<vmem>> -> memref<1x1x128xf32, #tpu.memory_space<vmem>>
    %36 = tpu.memref_squeeze %35 : memref<1x1x128xf32, #tpu.memory_space<vmem>> -> memref<1x128xf32, #tpu.memory_space<vmem>>
    %37 = tpu.memref_slice %arg5[%c4_i32] : memref<8x!tpu.dma_semaphore, #tpu.memory_space<semaphore_mem>> -> memref<1x!tpu.dma_semaphore, #tpu.memory_space<semaphore_mem>>
    %38 = tpu.memref_squeeze %37 : memref<1x!tpu.dma_semaphore, #tpu.memory_space<semaphore_mem>> -> memref<!tpu.dma_semaphore, #tpu.memory_space<semaphore_mem>>
    tpu.enqueue_dma source(%34 : memref<1x128xf32, #tpu.memory_space<any>>) target(%36 : memref<1x128xf32, #tpu.memory_space<vmem>>) target_semaphore(%38 : memref<!tpu.dma_semaphore, #tpu.memory_space<semaphore_mem>>)
    %39 = arith.index_cast %arg0 : i32 to index
    %c5 = arith.constant 5 : index
    %40 = memref.load %arg1[%39, %c5] : memref<2x8xi32, #tpu.memory_space<smem>>
    %c5_i32 = arith.constant 5 : i32
    %c0_i32_20 = arith.constant 0 : i32
    %41 = tpu.memref_slice %arg3[%40, %c0_i32_20] : memref<64x128xf32, #tpu.memory_space<any>> -> memref<1x128xf32, #tpu.memory_space<any>>
    %c0_i32_21 = arith.constant 0 : i32
    %c13_i32 = arith.constant 13 : i32
    %c0_i32_22 = arith.constant 0 : i32
    %42 = tpu.memref_slice %arg4[%c0_i32_21, %c13_i32, %c0_i32_22] : memref<1x16x128xf32, #tpu.memory_space<vmem>> -> memref<1x1x128xf32, #tpu.memory_space<vmem>>
    %43 = tpu.memref_squeeze %42 : memref<1x1x128xf32, #tpu.memory_space<vmem>> -> memref<1x128xf32, #tpu.memory_space<vmem>>
    %44 = tpu.memref_slice %arg5[%c5_i32] : memref<8x!tpu.dma_semaphore, #tpu.memory_space<semaphore_mem>> -> memref<1x!tpu.dma_semaphore, #tpu.memory_space<semaphore_mem>>
    %45 = tpu.memref_squeeze %44 : memref<1x!tpu.dma_semaphore, #tpu.memory_space<semaphore_mem>> -> memref<!tpu.dma_semaphore, #tpu.memory_space<semaphore_mem>>
    tpu.enqueue_dma source(%41 : memref<1x128xf32, #tpu.memory_space<any>>) target(%43 : memref<1x128xf32, #tpu.memory_space<vmem>>) target_semaphore(%45 : memref<!tpu.dma_semaphore, #tpu.memory_space<semaphore_mem>>)
    %46 = arith.index_cast %arg0 : i32 to index
    %c6 = arith.constant 6 : index
    %47 = memref.load %arg1[%46, %c6] : memref<2x8xi32, #tpu.memory_space<smem>>
    %c6_i32 = arith.constant 6 : i32
    %c0_i32_23 = arith.constant 0 : i32
    %48 = tpu.memref_slice %arg3[%47, %c0_i32_23] : memref<64x128xf32, #tpu.memory_space<any>> -> memref<1x128xf32, #tpu.memory_space<any>>
    %c0_i32_24 = arith.constant 0 : i32
    %c14_i32 = arith.constant 14 : i32
    %c0_i32_25 = arith.constant 0 : i32
    %49 = tpu.memref_slice %arg4[%c0_i32_24, %c14_i32, %c0_i32_25] : memref<1x16x128xf32, #tpu.memory_space<vmem>> -> memref<1x1x128xf32, #tpu.memory_space<vmem>>
    %50 = tpu.memref_squeeze %49 : memref<1x1x128xf32, #tpu.memory_space<vmem>> -> memref<1x128xf32, #tpu.memory_space<vmem>>
    %51 = tpu.memref_slice %arg5[%c6_i32] : memref<8x!tpu.dma_semaphore, #tpu.memory_space<semaphore_mem>> -> memref<1x!tpu.dma_semaphore, #tpu.memory_space<semaphore_mem>>
    %52 = tpu.memref_squeeze %51 : memref<1x!tpu.dma_semaphore, #tpu.memory_space<semaphore_mem>> -> memref<!tpu.dma_semaphore, #tpu.memory_space<semaphore_mem>>
    tpu.enqueue_dma source(%48 : memref<1x128xf32, #tpu.memory_space<any>>) target(%50 : memref<1x128xf32, #tpu.memory_space<vmem>>) target_semaphore(%52 : memref<!tpu.dma_semaphore, #tpu.memory_space<semaphore_mem>>)
    %53 = arith.index_cast %arg0 : i32 to index
    %c7 = arith.constant 7 : index
    %54 = memref.load %arg1[%53, %c7] : memref<2x8xi32, #tpu.memory_space<smem>>
    %c7_i32 = arith.constant 7 : i32
    %c0_i32_26 = arith.constant 0 : i32
    %55 = tpu.memref_slice %arg3[%54, %c0_i32_26] : memref<64x128xf32, #tpu.memory_space<any>> -> memref<1x128xf32, #tpu.memory_space<any>>
    %c0_i32_27 = arith.constant 0 : i32
    %c15_i32 = arith.constant 15 : i32
    %c0_i32_28 = arith.constant 0 : i32
    %56 = tpu.memref_slice %arg4[%c0_i32_27, %c15_i32, %c0_i32_28] : memref<1x16x128xf32, #tpu.memory_space<vmem>> -> memref<1x1x128xf32, #tpu.memory_space<vmem>>
    %57 = tpu.memref_squeeze %56 : memref<1x1x128xf32, #tpu.memory_space<vmem>> -> memref<1x128xf32, #tpu.memory_space<vmem>>
    %58 = tpu.memref_slice %arg5[%c7_i32] : memref<8x!tpu.dma_semaphore, #tpu.memory_space<semaphore_mem>> -> memref<1x!tpu.dma_semaphore, #tpu.memory_space<semaphore_mem>>
    %59 = tpu.memref_squeeze %58 : memref<1x!tpu.dma_semaphore, #tpu.memory_space<semaphore_mem>> -> memref<!tpu.dma_semaphore, #tpu.memory_space<semaphore_mem>>
    tpu.enqueue_dma source(%55 : memref<1x128xf32, #tpu.memory_space<any>>) target(%57 : memref<1x128xf32, #tpu.memory_space<vmem>>) target_semaphore(%59 : memref<!tpu.dma_semaphore, #tpu.memory_space<semaphore_mem>>)
    %c0_i32_29 = arith.constant 0 : i32
    %c0_i32_30 = arith.constant 0 : i32
    %c0_i32_31 = arith.constant 0 : i32
    %60 = tpu.memref_slice %arg3[%c0_i32_30, %c0_i32_31] : memref<64x128xf32, #tpu.memory_space<any>> -> memref<1x128xf32, #tpu.memory_space<any>>
    %c0_i32_32 = arith.constant 0 : i32
    %c8_i32_33 = arith.constant 8 : i32
    %c0_i32_34 = arith.constant 0 : i32
    %61 = tpu.memref_slice %arg4[%c0_i32_32, %c8_i32_33, %c0_i32_34] : memref<1x16x128xf32, #tpu.memory_space<vmem>> -> memref<1x1x128xf32, #tpu.memory_space<vmem>>
    %62 = tpu.memref_squeeze %61 : memref<1x1x128xf32, #tpu.memory_space<vmem>> -> memref<1x128xf32, #tpu.memory_space<vmem>>
    %63 = tpu.memref_slice %arg5[%c0_i32_29] : memref<8x!tpu.dma_semaphore, #tpu.memory_space<semaphore_mem>> -> memref<1x!tpu.dma_semaphore, #tpu.memory_space<semaphore_mem>>
    %64 = tpu.memref_squeeze %63 : memref<1x!tpu.dma_semaphore, #tpu.memory_space<semaphore_mem>> -> memref<!tpu.dma_semaphore, #tpu.memory_space<semaphore_mem>>
    tpu.wait_dma2 semaphore(%64 : memref<!tpu.dma_semaphore, #tpu.memory_space<semaphore_mem>>) src(%60 : memref<1x128xf32, #tpu.memory_space<any>>) dst(%62 : memref<1x128xf32, #tpu.memory_space<vmem>>)
    %c1_i32_35 = arith.constant 1 : i32
    %c0_i32_36 = arith.constant 0 : i32
    %c0_i32_37 = arith.constant 0 : i32
    %65 = tpu.memref_slice %arg3[%c0_i32_36, %c0_i32_37] : memref<64x128xf32, #tpu.memory_space<any>> -> memref<1x128xf32, #tpu.memory_space<any>>
    %c0_i32_38 = arith.constant 0 : i32
    %c8_i32_39 = arith.constant 8 : i32
    %c0_i32_40 = arith.constant 0 : i32
    %66 = tpu.memref_slice %arg4[%c0_i32_38, %c8_i32_39, %c0_i32_40] : memref<1x16x128xf32, #tpu.memory_space<vmem>> -> memref<1x1x128xf32, #tpu.memory_space<vmem>>
    %67 = tpu.memref_squeeze %66 : memref<1x1x128xf32, #tpu.memory_space<vmem>> -> memref<1x128xf32, #tpu.memory_space<vmem>>
    %68 = tpu.memref_slice %arg5[%c1_i32_35] : memref<8x!tpu.dma_semaphore, #tpu.memory_space<semaphore_mem>> -> memref<1x!tpu.dma_semaphore, #tpu.memory_space<semaphore_mem>>
    %69 = tpu.memref_squeeze %68 : memref<1x!tpu.dma_semaphore, #tpu.memory_space<semaphore_mem>> -> memref<!tpu.dma_semaphore, #tpu.memory_space<semaphore_mem>>
    tpu.wait_dma2 semaphore(%69 : memref<!tpu.dma_semaphore, #tpu.memory_space<semaphore_mem>>) src(%65 : memref<1x128xf32, #tpu.memory_space<any>>) dst(%67 : memref<1x128xf32, #tpu.memory_space<vmem>>)
    %c2_i32_41 = arith.constant 2 : i32
    %c0_i32_42 = arith.constant 0 : i32
    %c0_i32_43 = arith.constant 0 : i32
    %70 = tpu.memref_slice %arg3[%c0_i32_42, %c0_i32_43] : memref<64x128xf32, #tpu.memory_space<any>> -> memref<1x128xf32, #tpu.memory_space<any>>
    %c0_i32_44 = arith.constant 0 : i32
    %c8_i32_45 = arith.constant 8 : i32
    %c0_i32_46 = arith.constant 0 : i32
    %71 = tpu.memref_slice %arg4[%c0_i32_44, %c8_i32_45, %c0_i32_46] : memref<1x16x128xf32, #tpu.memory_space<vmem>> -> memref<1x1x128xf32, #tpu.memory_space<vmem>>
    %72 = tpu.memref_squeeze %71 : memref<1x1x128xf32, #tpu.memory_space<vmem>> -> memref<1x128xf32, #tpu.memory_space<vmem>>
    %73 = tpu.memref_slice %arg5[%c2_i32_41] : memref<8x!tpu.dma_semaphore, #tpu.memory_space<semaphore_mem>> -> memref<1x!tpu.dma_semaphore, #tpu.memory_space<semaphore_mem>>
    %74 = tpu.memref_squeeze %73 : memref<1x!tpu.dma_semaphore, #tpu.memory_space<semaphore_mem>> -> memref<!tpu.dma_semaphore, #tpu.memory_space<semaphore_mem>>
    tpu.wait_dma2 semaphore(%74 : memref<!tpu.dma_semaphore, #tpu.memory_space<semaphore_mem>>) src(%70 : memref<1x128xf32, #tpu.memory_space<any>>) dst(%72 : memref<1x128xf32, #tpu.memory_space<vmem>>)
    %c3_i32_47 = arith.constant 3 : i32
    %c0_i32_48 = arith.constant 0 : i32
    %c0_i32_49 = arith.constant 0 : i32
    %75 = tpu.memref_slice %arg3[%c0_i32_48, %c0_i32_49] : memref<64x128xf32, #tpu.memory_space<any>> -> memref<1x128xf32, #tpu.memory_space<any>>
    %c0_i32_50 = arith.constant 0 : i32
    %c8_i32_51 = arith.constant 8 : i32
    %c0_i32_52 = arith.constant 0 : i32
    %76 = tpu.memref_slice %arg4[%c0_i32_50, %c8_i32_51, %c0_i32_52] : memref<1x16x128xf32, #tpu.memory_space<vmem>> -> memref<1x1x128xf32, #tpu.memory_space<vmem>>
    %77 = tpu.memref_squeeze %76 : memref<1x1x128xf32, #tpu.memory_space<vmem>> -> memref<1x128xf32, #tpu.memory_space<vmem>>
    %78 = tpu.memref_slice %arg5[%c3_i32_47] : memref<8x!tpu.dma_semaphore, #tpu.memory_space<semaphore_mem>> -> memref<1x!tpu.dma_semaphore, #tpu.memory_space<semaphore_mem>>
    %79 = tpu.memref_squeeze %78 : memref<1x!tpu.dma_semaphore, #tpu.memory_space<semaphore_mem>> -> memref<!tpu.dma_semaphore, #tpu.memory_space<semaphore_mem>>
    tpu.wait_dma2 semaphore(%79 : memref<!tpu.dma_semaphore, #tpu.memory_space<semaphore_mem>>) src(%75 : memref<1x128xf32, #tpu.memory_space<any>>) dst(%77 : memref<1x128xf32, #tpu.memory_space<vmem>>)
    %c4_i32_53 = arith.constant 4 : i32
    %c0_i32_54 = arith.constant 0 : i32
    %c0_i32_55 = arith.constant 0 : i32
    %80 = tpu.memref_slice %arg3[%c0_i32_54, %c0_i32_55] : memref<64x128xf32, #tpu.memory_space<any>> -> memref<1x128xf32, #tpu.memory_space<any>>
    %c0_i32_56 = arith.constant 0 : i32
    %c8_i32_57 = arith.constant 8 : i32
    %c0_i32_58 = arith.constant 0 : i32
    %81 = tpu.memref_slice %arg4[%c0_i32_56, %c8_i32_57, %c0_i32_58] : memref<1x16x128xf32, #tpu.memory_space<vmem>> -> memref<1x1x128xf32, #tpu.memory_space<vmem>>
    %82 = tpu.memref_squeeze %81 : memref<1x1x128xf32, #tpu.memory_space<vmem>> -> memref<1x128xf32, #tpu.memory_space<vmem>>
    %83 = tpu.memref_slice %arg5[%c4_i32_53] : memref<8x!tpu.dma_semaphore, #tpu.memory_space<semaphore_mem>> -> memref<1x!tpu.dma_semaphore, #tpu.memory_space<semaphore_mem>>
    %84 = tpu.memref_squeeze %83 : memref<1x!tpu.dma_semaphore, #tpu.memory_space<semaphore_mem>> -> memref<!tpu.dma_semaphore, #tpu.memory_space<semaphore_mem>>
    tpu.wait_dma2 semaphore(%84 : memref<!tpu.dma_semaphore, #tpu.memory_space<semaphore_mem>>) src(%80 : memref<1x128xf32, #tpu.memory_space<any>>) dst(%82 : memref<1x128xf32, #tpu.memory_space<vmem>>)
    %c5_i32_59 = arith.constant 5 : i32
    %c0_i32_60 = arith.constant 0 : i32
    %c0_i32_61 = arith.constant 0 : i32
    %85 = tpu.memref_slice %arg3[%c0_i32_60, %c0_i32_61] : memref<64x128xf32, #tpu.memory_space<any>> -> memref<1x128xf32, #tpu.memory_space<any>>
    %c0_i32_62 = arith.constant 0 : i32
    %c8_i32_63 = arith.constant 8 : i32
    %c0_i32_64 = arith.constant 0 : i32
    %86 = tpu.memref_slice %arg4[%c0_i32_62, %c8_i32_63, %c0_i32_64] : memref<1x16x128xf32, #tpu.memory_space<vmem>> -> memref<1x1x128xf32, #tpu.memory_space<vmem>>
    %87 = tpu.memref_squeeze %86 : memref<1x1x128xf32, #tpu.memory_space<vmem>> -> memref<1x128xf32, #tpu.memory_space<vmem>>
    %88 = tpu.memref_slice %arg5[%c5_i32_59] : memref<8x!tpu.dma_semaphore, #tpu.memory_space<semaphore_mem>> -> memref<1x!tpu.dma_semaphore, #tpu.memory_space<semaphore_mem>>
    %89 = tpu.memref_squeeze %88 : memref<1x!tpu.dma_semaphore, #tpu.memory_space<semaphore_mem>> -> memref<!tpu.dma_semaphore, #tpu.memory_space<semaphore_mem>>
    tpu.wait_dma2 semaphore(%89 : memref<!tpu.dma_semaphore, #tpu.memory_space<semaphore_mem>>) src(%85 : memref<1x128xf32, #tpu.memory_space<any>>) dst(%87 : memref<1x128xf32, #tpu.memory_space<vmem>>)
    %c6_i32_65 = arith.constant 6 : i32
    %c0_i32_66 = arith.constant 0 : i32
    %c0_i32_67 = arith.constant 0 : i32
    %90 = tpu.memref_slice %arg3[%c0_i32_66, %c0_i32_67] : memref<64x128xf32, #tpu.memory_space<any>> -> memref<1x128xf32, #tpu.memory_space<any>>
    %c0_i32_68 = arith.constant 0 : i32
    %c8_i32_69 = arith.constant 8 : i32
    %c0_i32_70 = arith.constant 0 : i32
    %91 = tpu.memref_slice %arg4[%c0_i32_68, %c8_i32_69, %c0_i32_70] : memref<1x16x128xf32, #tpu.memory_space<vmem>> -> memref<1x1x128xf32, #tpu.memory_space<vmem>>
    %92 = tpu.memref_squeeze %91 : memref<1x1x128xf32, #tpu.memory_space<vmem>> -> memref<1x128xf32, #tpu.memory_space<vmem>>
    %93 = tpu.memref_slice %arg5[%c6_i32_65] : memref<8x!tpu.dma_semaphore, #tpu.memory_space<semaphore_mem>> -> memref<1x!tpu.dma_semaphore, #tpu.memory_space<semaphore_mem>>
    %94 = tpu.memref_squeeze %93 : memref<1x!tpu.dma_semaphore, #tpu.memory_space<semaphore_mem>> -> memref<!tpu.dma_semaphore, #tpu.memory_space<semaphore_mem>>
    tpu.wait_dma2 semaphore(%94 : memref<!tpu.dma_semaphore, #tpu.memory_space<semaphore_mem>>) src(%90 : memref<1x128xf32, #tpu.memory_space<any>>) dst(%92 : memref<1x128xf32, #tpu.memory_space<vmem>>)
    %c7_i32_71 = arith.constant 7 : i32
    %c0_i32_72 = arith.constant 0 : i32
    %c0_i32_73 = arith.constant 0 : i32
    %95 = tpu.memref_slice %arg3[%c0_i32_72, %c0_i32_73] : memref<64x128xf32, #tpu.memory_space<any>> -> memref<1x128xf32, #tpu.memory_space<any>>
    %c0_i32_74 = arith.constant 0 : i32
    %c8_i32_75 = arith.constant 8 : i32
    %c0_i32_76 = arith.constant 0 : i32
    %96 = tpu.memref_slice %arg4[%c0_i32_74, %c8_i32_75, %c0_i32_76] : memref<1x16x128xf32, #tpu.memory_space<vmem>> -> memref<1x1x128xf32, #tpu.memory_space<vmem>>
    %97 = tpu.memref_squeeze %96 : memref<1x1x128xf32, #tpu.memory_space<vmem>> -> memref<1x128xf32, #tpu.memory_space<vmem>>
    %98 = tpu.memref_slice %arg5[%c7_i32_71] : memref<8x!tpu.dma_semaphore, #tpu.memory_space<semaphore_mem>> -> memref<1x!tpu.dma_semaphore, #tpu.memory_space<semaphore_mem>>
    %99 = tpu.memref_squeeze %98 : memref<1x!tpu.dma_semaphore, #tpu.memory_space<semaphore_mem>> -> memref<!tpu.dma_semaphore, #tpu.memory_space<semaphore_mem>>
    tpu.wait_dma2 semaphore(%99 : memref<!tpu.dma_semaphore, #tpu.memory_space<semaphore_mem>>) src(%95 : memref<1x128xf32, #tpu.memory_space<any>>) dst(%97 : memref<1x128xf32, #tpu.memory_space<vmem>>)
    return
  }
  func.func @transform_0(%arg0: i32, %arg1: memref<2x8xi32, #tpu.memory_space<smem>>) -> (i32, i32) {
    %c0_i32 = arith.constant 0 : i32
    %c0_i32_0 = arith.constant 0 : i32
    %c0_i32_1 = arith.constant 0 : i32
    return %c0_i32, %c0_i32_0 : i32, i32
  }
  func.func @transform_2(%arg0: i32, %arg1: memref<2x8xi32, #tpu.memory_space<smem>>) -> (i32, i32, i32) {
    %c0_i32 = arith.constant 0 : i32
    %c0_i32_0 = arith.constant 0 : i32
    %c0_i32_1 = arith.constant 0 : i32
    return %arg0, %c0_i32, %c0_i32_0 : i32, i32, i32
  }
}

</mosaic_0001>

<bundles_post_ra>
// kernel: tpu_custom_call.1
= control target key start
LH: loop header
LB: loop body
LE: loop exit
PB: predicated region body
PF: predicated region fallthrough
CT: control target
= control target key end

     0   :  { %s817_s15 = smov [#allocation4]   ;;  %s1036_s0 = inlined_call_operand.hbm [shape: s32[2,8], index: 0, kind: input, shape index: {}]   ;;  %s1037_s1 = inlined_call_operand.hbm [shape: f32[8,128], index: 1, kind: input, shape index: {}]   ;;  %s1038_s2 = inlined_call_operand.hbm [shape: f32[64,128], index: 2, kind: input, shape index: {}]   ;;  %s1039_s3 = inlined_call_operand.hbm [shape: f32[2,16,128], index: 3, kind: output, shape index: {}]  }
   0x1   :  { %1042 = sst [smem:[#allocation39_spill]] %s1037_s1  ;;  %s9_s14 = sshll.u32 %s1036_s0, 4  ;;  %s10_s14 = int_to_ptr.hbm [resolvable:$true] %s9_s14 }
   0x2   :  { %12 = dma.hbm_to_smem %s10_s14, 32, %s817_s15, [#allocation3] }
   0x3   :  { %775 = dma.done.wait [#allocation3], 32 }
   0x4   :  { %776 = vsyncadd [#allocation3], 4294967264 }
   0x5   :  { %15 = sfence }
   0x6   :  { %16 = vsyncpa [#allocation6], 0 }
   0x7   :  { %17 = vsyncpa [#allocation7], 0 }
   0x8   :  { %19 = vsyncpa [#allocation7 + $0x1], 0  ;;  %s844_s16 = smov 0   ;;  %s846_s17 = smov 0  }
   0x9   :  { %s848_s18 = smov 0   ;;  %s850_s19 = smov 0  }
   0xa LB: > { %s865_s0 = sadd.s32 4294967295, %s815_s19   ;;  %s423_s20 = sadd.s32 4294967294, %s815_s19   ;;  %s815_s19 = sphi %s850_s19, %s1053_s19   ;;  %s811_s18 = sphi %s848_s18, %s1052_s18   ;;  %s807_s17 = sphi %s846_s17, %s1051_s17   ;;  %s803_s16 = sphi %s844_s16, %s1050_s16  }
   0xb   : > { %s869_s21 = sadd.s32 1, %s815_s19   ;;  %s53_s22 = sadd.s32 1, %s811_s18 }
   0xc   : > { %s50_s23 = ssub.s32 %s815_s19, %s869_s21  ;;  %p63_p0 = scmp.ne.s32.totalorder %s811_s18, %s807_s17 }
   0xd   : > { %p51_p1 = scmp.eq.s32.totalorder %s50_s23, 0  ;;  %p64_p2 = scmp.eq.s32.totalorder %s865_s0, 1 }
   0xe   : > { %p69_p3 = scmp.ne.s32.totalorder %s807_s17, %s803_s16  ;;  %p70_p4 = scmp.eq.s32.totalorder %s423_s20, 1 }
   0xf   : > { %s880_s24 = scalar_select %p51_p1, %s811_s18, %s53_s22  }
  0x10   : > { %p882_p5 = por %p64_p2, %p63_p0  ;;  %p886_p6 = por %p70_p4, %p69_p3 }
  0x11   : > { %p424_p7 = scmp.ge.s32.totalorder %s815_s19, 1  ;;  %p77_p8 = scmp.lt.s32.totalorder %s815_s19, 3 }
  0x12   : > { %p458_p9 = scmp.eq.s32.totalorder %s865_s0, 0  ;;  %s1045_s1 = sld [smem:[#allocation39_spill]] }
  0x13   : > { %p78_p10 = pnand %p424_p7, %p77_p8  ;;  %s818_s30 = smov [#allocation5]  }
  0x14   : > { %s91_s4 = sshll.u32 %s818_s30, 4  ;;  %s92_s4 = int_to_ptr.vmem [resolvable:$true] %s91_s4 }
  0x15   : > { %p450_p11 = pneg %p78_p10  ;;  %104 = sbr.rel (%p78_p10) target bundleno = 165 (0xa5), region = 24 }
  0x17   : > { %p451_p12 = pnand %p458_p9, %p450_p11 }
  0x18   : > { %s89_s29 = sshll.u32 %s1045_s1, 4  ;;  %s90_s29 = int_to_ptr.hbm [resolvable:$true] %s89_s29 }
  0x19   : > { %453 = dma.hbm_to_vmem [thread:$0]  (!%p451_p12), %s90_s29, 128, %s92_s4, [#allocation6]  }
  0x1a   : > { %778 = dma.done.wait (%p458_p9), [#allocation6], 128  }
  0x1b   : > { %780 = vsyncadd (%p458_p9), [#allocation6], 4294967168  ;;  %s1040_s5 = sand.u32 1, %s807_s17   ;;  %s898_s6 = sshll.u32 %s865_s0, 7  ;;  %v120_v0 = vld [vmem:[#allocation5] sm:$0xff] }
  0x1c   : > { %s428_s7 = sshll.u32 %s1040_s5, 4  ;;  %s123_s8 = sld [smem:[#allocation4 + %s898_s6]] }
  0x1d   : > { %s139_s9 = sadd.s32 1, %s898_s6  ;;  %s904_s10 = scalar_lea.vmem [#allocation8], %s428_s7 }
  0x1e   : > { %s125_s11 = scalar_lea.vmem %s904_s10, 8 [#allocation8]  ;;  %s140_s12 = sld [smem:[#allocation4 + %s139_s9]]  ;;  %121 = vst [vmem:[%s904_s10] sm:$0xff] %v120_v0 }
  0x1f   : > { %s135_s13 = sshll.u32 %s125_s11, 4  ;;  %s142_s14 = scalar_lea.vmem %s904_s10, 9 [#allocation8]  ;;  %s136_s13 = int_to_ptr.vmem [resolvable:$true] %s135_s13 }
  0x20   : > { %s908_s15 = sshll.u32 %s142_s14, 4  ;;  %s157_s20 = sadd.s32 2, %s898_s6 }
  0x21   : > { %1046 = sst [smem:[#allocation38_spill]] %s908_s15  ;;  %s160_s30 = scalar_lea.vmem %s904_s10, 10 [#allocation8] }
  0x22   : > { %s124_s27 = scalar_lea.hbm %s1038_s2, %s123_s8  ;;  %s915_s28 = sld [smem:[#allocation4 + %s157_s20]] }
  0x23   : > { %s133_s29 = sshll.u32 %s124_s27, 4  ;;  %s925_s1 = scalar_lea.hbm %s1038_s2, 64  ;;  %s134_s29 = int_to_ptr.hbm [resolvable:$true] %s133_s29 }
  0x24   : > { %s141_s9 = scalar_lea.hbm %s1038_s2, %s140_s12  ;;  %s539_s11 = sshra.s32 %s134_s29, 4  ;;  %s540_s11 = int_to_ptr.hbm [resolvable:$true] %s539_s11 }
  0x25   : > { %s541_s14 = scalar_lea.hbm %s540_s11, 1  ;;  %p544_p0 = scmp.lt.s32.totalorder %s540_s11, %s1038_s2 }
  0x26   : > { %p542_p13 = scmp.ne.s32.totalorder %s540_s11, %s541_s14  ;;  %p545_p1 = scmp.lt.s32.totalorder %s925_s1, %s541_s14 }
  0x28   : > { %p546_p2 = por %p545_p1, %p544_p0 }
  0x2a   : > { %p547_p3 = pnand %p546_p2, %p542_p13 }
  0x2c   : > { %550 = shalt.err (!%p547_p3)  }
  0x2d   : > { %138 = dma.hbm_to_vmem [thread:$0]  %s134_s29, 16, %s136_s13, [#allocation2] }
  0x2e   : > { %s151_s12 = sshll.u32 %s141_s9, 4  ;;  %s931_s22 = sshll.u32 %s160_s30, 4  ;;  %s152_s12 = int_to_ptr.hbm [resolvable:$true] %s151_s12  ;;  %s172_s22 = int_to_ptr.vmem [resolvable:$true] %s931_s22 }
  0x2f   : > { %s563_s5 = sshra.s32 %s152_s12, 4  ;;  %s564_s5 = int_to_ptr.hbm [resolvable:$true] %s563_s5 }
  0x30   : > { %s565_s15 = scalar_lea.hbm %s564_s5, 1  ;;  %p568_p7 = scmp.lt.s32.totalorder %s564_s5, %s1038_s2 }
  0x31   : > { %p566_p4 = scmp.ne.s32.totalorder %s564_s5, %s565_s15  ;;  %p569_p8 = scmp.lt.s32.totalorder %s925_s1, %s565_s15 }
  0x33   : > { %p570_p9 = por %p569_p8, %p568_p7 }
  0x35   : > { %p571_p10 = pnand %p570_p9, %p566_p4 }
  0x37   : > { %574 = shalt.err (!%p571_p10)  }
  0x38   : > { %s1047_s13 = sld [smem:[#allocation38_spill]]  ;;  %s159_s7 = scalar_lea.hbm %s1038_s2, %s915_s28 }
  0x39   : > { %s175_s9 = sadd.s32 3, %s898_s6  ;;  %s169_s11 = sshll.u32 %s159_s7, 4  ;;  %s170_s11 = int_to_ptr.hbm [resolvable:$true] %s169_s11 }
  0x3a   : > { %s176_s14 = sld [smem:[#allocation4 + %s175_s9]]  ;;  %s178_s8 = scalar_lea.vmem %s904_s10, 11 [#allocation8] }
  0x3b   : > { %s587_s20 = sshra.s32 %s170_s11, 4  ;;  %s588_s20 = int_to_ptr.hbm [resolvable:$true] %s587_s20 }
  0x3c   : > { %s589_s5 = scalar_lea.hbm %s588_s20, 1  ;;  %p592_p12 = scmp.lt.s32.totalorder %s588_s20, %s1038_s2 }
  0x3d   : > { %p590_p11 = scmp.ne.s32.totalorder %s588_s20, %s589_s5  ;;  %p593_p13 = scmp.lt.s32.totalorder %s925_s1, %s589_s5 }
  0x3e   : > { %s1048_s29 = int_to_ptr.vmem [resolvable:$true] %s1047_s13 }
  0x3f   : > { %156 = dma.hbm_to_vmem [thread:$0]  %s152_s12, 16, %s1048_s29, [#allocation2 + $0x1] }
  0x40   : > { %p594_p0 = por %p593_p13, %p592_p12 }
  0x42   : > { %p595_p1 = pnand %p594_p0, %p590_p11 }
  0x44   : > { %598 = shalt.err (!%p595_p1)  }
  0x45   : > { %174 = dma.hbm_to_vmem [thread:$0]  %s170_s11, 16, %s172_s22, [#allocation2 + $0x2] }
  0x46   : > { %s189_s28 = sshll.u32 %s178_s8, 4  ;;  %s193_s12 = sadd.s32 4, %s898_s6  ;;  %s190_s28 = int_to_ptr.vmem [resolvable:$true] %s189_s28 }
  0x47   : > { %s194_s27 = sld [smem:[#allocation4 + %s193_s12]]  ;;  %s196_s13 = scalar_lea.vmem %s904_s10, 12 [#allocation8] }
  0x48   : > { %s211_s29 = sadd.s32 5, %s898_s6  ;;  %s177_s7 = scalar_lea.hbm %s1038_s2, %s176_s14 }
  0x49   : > { %s956_s9 = sshll.u32 %s196_s13, 4  ;;  %s187_s20 = sshll.u32 %s177_s7, 4  ;;  %s208_s9 = int_to_ptr.vmem [resolvable:$true] %s956_s9  ;;  %s188_s20 = int_to_ptr.hbm [resolvable:$true] %s187_s20 }
  0x4a   : > { %s959_s22 = sld [smem:[#allocation4 + %s211_s29]]  ;;  %s611_s11 = sshra.s32 %s188_s20, 4  ;;  %s612_s11 = int_to_ptr.hbm [resolvable:$true] %s611_s11 }
  0x4b   : > { %s613_s8 = scalar_lea.hbm %s612_s11, 1  ;;  %p616_p3 = scmp.lt.s32.totalorder %s612_s11, %s1038_s2 }
  0x4c   : > { %p614_p2 = scmp.ne.s32.totalorder %s612_s11, %s613_s8  ;;  %p617_p4 = scmp.lt.s32.totalorder %s925_s1, %s613_s8 }
  0x4e   : > { %p618_p7 = por %p617_p4, %p616_p3 }
  0x50   : > { %p619_p8 = pnand %p618_p7, %p614_p2 }
  0x52   : > { %622 = shalt.err (!%p619_p8)  }
  0x53   : > { %192 = dma.hbm_to_vmem [thread:$0]  %s188_s20, 16, %s190_s28, [#allocation2 + $0x3] }
  0x54   : > { %s195_s12 = scalar_lea.hbm %s1038_s2, %s194_s27  ;;  %s214_s13 = scalar_lea.vmem %s904_s10, 13 [#allocation8] }
  0x55   : > { %s205_s29 = sshll.u32 %s195_s12, 4  ;;  %s969_s30 = sshll.u32 %s214_s13, 4  ;;  %s206_s29 = int_to_ptr.hbm [resolvable:$true] %s205_s29  ;;  %s226_s30 = int_to_ptr.vmem [resolvable:$true] %s969_s30 }
  0x56   : > { %s635_s4 = sshra.s32 %s206_s29, 4  ;;  %s636_s4 = int_to_ptr.hbm [resolvable:$true] %s635_s4 }
  0x57   : > { %s637_s7 = scalar_lea.hbm %s636_s4, 1  ;;  %p640_p10 = scmp.lt.s32.totalorder %s636_s4, %s1038_s2 }
  0x58   : > { %p638_p9 = scmp.ne.s32.totalorder %s636_s4, %s637_s7  ;;  %p641_p11 = scmp.lt.s32.totalorder %s925_s1, %s637_s7 }
  0x5a   : > { %p642_p12 = por %p641_p11, %p640_p10 }
  0x5c   : > { %p643_p13 = pnand %p642_p12, %p638_p9 }
  0x5e   : > { %646 = shalt.err (!%p643_p13)  }
  0x5f   : > { %210 = dma.hbm_to_vmem [thread:$0]  %s206_s29, 16, %s208_s9, [#allocation2 + $0x4] }
  0x60   : > { %s213_s20 = scalar_lea.hbm %s1038_s2, %s959_s22  ;;  %s229_s5 = sadd.s32 6, %s898_s6 }
  0x61   : > { %s223_s15 = sshll.u32 %s213_s20, 4  ;;  %s230_s14 = sld [smem:[#allocation4 + %s229_s5]]  ;;  %s224_s15 = int_to_ptr.hbm [resolvable:$true] %s223_s15 }
  0x62   : > { %s232_s23 = scalar_lea.vmem %s904_s10, 14 [#allocation8]  ;;  %s659_s12 = sshra.s32 %s224_s15, 4  ;;  %s660_s12 = int_to_ptr.hbm [resolvable:$true] %s659_s12 }
  0x63   : > { %s661_s13 = scalar_lea.hbm %s660_s12, 1  ;;  %p664_p1 = scmp.lt.s32.totalorder %s660_s12, %s1038_s2 }
  0x64   : > { %p662_p0 = scmp.ne.s32.totalorder %s660_s12, %s661_s13  ;;  %p665_p2 = scmp.lt.s32.totalorder %s925_s1, %s661_s13 }
  0x66   : > { %p666_p3 = por %p665_p2, %p664_p1 }
  0x68   : > { %p667_p4 = pnand %p666_p3, %p662_p0 }
  0x6a   : > { %670 = shalt.err (!%p667_p4)  }
  0x6b   : > { %228 = dma.hbm_to_vmem [thread:$0]  %s224_s15, 16, %s226_s30, [#allocation2 + $0x5] }
  0x6c   : > { %s243_s9 = sshll.u32 %s232_s23, 4  ;;  %s247_s22 = sadd.s32 7, %s898_s6  ;;  %s244_s9 = int_to_ptr.vmem [resolvable:$true] %s243_s9 }
  0x6d   : > { %s248_s29 = sld [smem:[#allocation4 + %s247_s22]]  ;;  %s250_s11 = scalar_lea.vmem %s904_s10, 15 [#allocation8] }
  0x6e   : > { %s231_s27 = scalar_lea.hbm %s1038_s2, %s230_s14  ;;  %s261_s5 = sshll.u32 %s250_s11, 4  ;;  %s262_s5 = int_to_ptr.vmem [resolvable:$true] %s261_s5 }
  0x6f   : > { %s241_s20 = sshll.u32 %s231_s27, 4  ;;  %s242_s20 = int_to_ptr.hbm [resolvable:$true] %s241_s20 }
  0x70   : > { %s683_s12 = sshra.s32 %s242_s20, 4  ;;  %s684_s12 = int_to_ptr.hbm [resolvable:$true] %s683_s12 }
  0x71   : > { %s685_s13 = scalar_lea.hbm %s684_s12, 1  ;;  %p688_p8 = scmp.lt.s32.totalorder %s684_s12, %s1038_s2 }
  0x72   : > { %p686_p7 = scmp.ne.s32.totalorder %s684_s12, %s685_s13  ;;  %p689_p9 = scmp.lt.s32.totalorder %s925_s1, %s685_s13 }
  0x74   : > { %p690_p10 = por %p689_p9, %p688_p8 }
  0x76   : > { %p691_p11 = pnand %p690_p10, %p686_p7 }
  0x78   : > { %694 = shalt.err (!%p691_p11)  }
  0x79   : > { %246 = dma.hbm_to_vmem [thread:$0]  %s242_s20, 16, %s244_s9, [#allocation2 + $0x6] }
  0x7a   : > { %s249_s14 = scalar_lea.hbm %s1038_s2, %s248_s29 }
  0x7b   : > { %s259_s4 = sshll.u32 %s249_s14, 4  ;;  %s260_s4 = int_to_ptr.hbm [resolvable:$true] %s259_s4 }
  0x7c   : > { %s707_s7 = sshra.s32 %s260_s4, 4  ;;  %s708_s7 = int_to_ptr.hbm [resolvable:$true] %s707_s7 }
  0x7d   : > { %s709_s22 = scalar_lea.hbm %s708_s7, 1  ;;  %p712_p13 = scmp.lt.s32.totalorder %s708_s7, %s1038_s2 }
  0x7e   : > { %p710_p12 = scmp.ne.s32.totalorder %s708_s7, %s709_s22  ;;  %p713_p0 = scmp.lt.s32.totalorder %s925_s1, %s709_s22 }
  0x80   : > { %p714_p1 = por %p713_p0, %p712_p13 }
  0x82   : > { %p715_p2 = pnand %p714_p1, %p710_p12 }
  0x84   : > { %718 = shalt.err (!%p715_p2)  }
  0x85   : > { %264 = dma.hbm_to_vmem [thread:$0]  %s260_s4, 16, %s262_s5, [#allocation2 + $0x7] }
  0x86   : > { %781 = dma.done.wait [#allocation2], 16 }
  0x87   : > { %782 = vsyncadd [#allocation2], 4294967280 }
  0x88   : > { %783 = dma.done.wait [#allocation2 + $0x1], 16 }
  0x89   : > { %784 = vsyncadd [#allocation2 + $0x1], 4294967280 }
  0x8a   : > { %785 = dma.done.wait [#allocation2 + $0x2], 16 }
  0x8b   : > { %786 = vsyncadd [#allocation2 + $0x2], 4294967280 }
  0x8c   : > { %787 = dma.done.wait [#allocation2 + $0x3], 16 }
  0x8d   : > { %788 = vsyncadd [#allocation2 + $0x3], 4294967280 }
  0x8e   : > { %789 = dma.done.wait [#allocation2 + $0x4], 16 }
  0x8f   : > { %790 = vsyncadd [#allocation2 + $0x4], 4294967280 }
  0x90   : > { %791 = dma.done.wait [#allocation2 + $0x5], 16 }
  0x91   : > { %792 = vsyncadd [#allocation2 + $0x5], 4294967280 }
  0x92   : > { %793 = dma.done.wait [#allocation2 + $0x6], 16 }
  0x93   : > { %794 = vsyncadd [#allocation2 + $0x6], 4294967280 }
  0x94   : > { %795 = dma.done.wait [#allocation2 + $0x7], 16 }
  0x95   : > { %796 = vsyncadd [#allocation2 + $0x7], 4294967280  ;;  %s443_s1 = sshll.u32 %s865_s0, 4  ;;  %s295_s27 = sshll.u32 %s904_s10, 4  ;;  %s296_s27 = int_to_ptr.vmem [resolvable:$true] %s295_s27 }
  0x96   : > { %s294_s28 = scalar_lea.hbm %s1039_s3, %s443_s1  ;;  %s1049_s5 = sand.u32 1, %s807_s17  }
  0x97   : > { %s297_s20 = sshll.u32 %s294_s28, 4  ;;  %s283_s12 = scalar_lea.sflag [#allocation7], %s1049_s5  ;;  %s298_s20 = int_to_ptr.hbm [resolvable:$true] %s297_s20 }
  0x98   : > { %s745_s13 = sshra.s32 %s298_s20, 4  ;;  %s751_s0 = scalar_lea.hbm %s1039_s3, 32  ;;  %s746_s13 = int_to_ptr.hbm [resolvable:$true] %s745_s13 }
  0x99   : > { %s747_s30 = scalar_lea.hbm %s746_s13, 16  ;;  %p752_p8 = scmp.lt.s32.totalorder %s746_s13, %s1039_s3 }
  0x9a   : > { %p748_p3 = scmp.ne.s32.totalorder %s746_s13, %s747_s30  ;;  %p753_p9 = scmp.lt.s32.totalorder %s751_s0, %s747_s30 }
  0x9c   : > { %p749_p4 = pnand %p748_p3, %p882_p5  ;;  %p754_p10 = por %p753_p9, %p752_p8 }
  0x9e   : > { %p750_p7 = pneg %p749_p4 }
  0xa0   : > { %p755_p11 = pnand %p754_p10, %p750_p7 }
  0xa2   : > { %758 = shalt.err (!%p755_p11)
}
  0xa3   : > { %s819_s10 = smov 128   ;;  %s820_s4 = smov 8  }
  0xa4   : > { %448 = dma.vmem_to_hbm [thread:$0]  (%p882_p5), %s296_s27, 256, %s298_s20, %s283_s12, %s819_s10, %s819_s10, %s820_s4  }
  0xa5 PF: > { %p460_p12 = scmp.ge.s32.totalorder %s815_s19, 2  ;;  %s312_s7 = sand.u32 1, %s803_s16  }
  0xa6   : > { %s313_s22 = scalar_lea.sflag [#allocation7], %s312_s7 }
  0xa7   : > { %p455_p13 = pnand %p460_p12, %p886_p6 }
  0xa9   : > { %p456_p0 = pneg %p455_p13 }
  0xab   : > { %798 = dma.done.wait (%p456_p0), %s313_s22, 256  }
  0xac   : > { %800 = vsyncadd (%p456_p0), %s313_s22, 4294967040  ;;  %p22_p1 = scmp.ge.s32.totalorder %s869_s21, 4   ;;  %s1050_s16 = smov %s807_s17 }
  0xad   : > { %s1051_s17 = smov %s811_s18  ;;  %s1052_s18 = smov %s880_s24 }
  0xae   : > { %s1053_s19 = smov %s869_s21  ;;  %24 = sbr.rel (!%p22_p1) target bundleno = 10 (0xa), region = 123 }
  0xb3   :  { %319 = vsyncpa [#allocation6], 1 }
  0xb4   :  { %321 = vsyncpa [#allocation6 + $0x1], 1 }
  0xb5   :  { %322 = vsyncpa [#allocation7], 1 }
  0xb6   :  { %324 = vsyncpa [#allocation7 + $0x1], 1 }
  0xb7   :  { %325 = vsyncmov [#allocation2] }
  0xba   :  { %s326_s19 = vpop.sfrf %325 }
  0xbb   :  { %p435_p5 = scmp.ne.s32.totalorder %s326_s19, 0 }
  0xbd   :  { %330 = shalt.err (%p435_p5)  }
  0xbe   :  { %332 = vsyncmov [#allocation2 + $0x1] }
  0xc1   :  { %s333_s25 = vpop.sfrf %332 }
  0xc2   :  { %p436_p6 = scmp.ne.s32.totalorder %s333_s25, 0 }
  0xc4   :  { %337 = shalt.err (%p436_p6)  }
  0xc5   :  { %339 = vsyncmov [#allocation2 + $0x2] }
  0xc8   :  { %s340_s26 = vpop.sfrf %339 }
  0xc9   :  { %p437_p2 = scmp.ne.s32.totalorder %s340_s26, 0 }
  0xcb   :  { %344 = shalt.err (%p437_p2)  }
  0xcc   :  { %346 = vsyncmov [#allocation2 + $0x3] }
  0xcf   :  { %s347_s24 = vpop.sfrf %346 }
  0xd0   :  { %p438_p3 = scmp.ne.s32.totalorder %s347_s24, 0 }
  0xd2   :  { %351 = shalt.err (%p438_p3)  }
  0xd3   :  { %353 = vsyncmov [#allocation2 + $0x4] }
  0xd6   :  { %s354_s2 = vpop.sfrf %353 }
  0xd7   :  { %p439_p4 = scmp.ne.s32.totalorder %s354_s2, 0 }
  0xd9   :  { %358 = shalt.err (%p439_p4)  }
  0xda   :  { %360 = vsyncmov [#allocation2 + $0x5] }
  0xdd   :  { %s361_s3 = vpop.sfrf %360 }
  0xde   :  { %p440_p7 = scmp.ne.s32.totalorder %s361_s3, 0 }
  0xe0   :  { %365 = shalt.err (%p440_p7)  }
  0xe1   :  { %367 = vsyncmov [#allocation2 + $0x6] }
  0xe4   :  { %s368_s16 = vpop.sfrf %367 }
  0xe5   :  { %p441_p8 = scmp.ne.s32.totalorder %s368_s16, 0 }
  0xe7   :  { %372 = shalt.err (%p441_p8)  }
  0xe8   :  { %374 = vsyncmov [#allocation2 + $0x7] }
  0xeb   :  { %s375_s17 = vpop.sfrf %374 }
  0xec   :  { %p442_p9 = scmp.ne.s32.totalorder %s375_s17, 0 }
  0xee   :  { %379 = shalt.err (%p442_p9)  }

</bundles_post_ra>
